<compile_context>
chip_gen: v6e
topology: v6e:2x2x1
jax: 0.10.0
libtpu: 0.0.40
codegen_flags: <defaults>
</compile_context>

<pallas_src>
import jax
import jax.numpy as jnp
from jax.experimental import pallas as pl
from jax.experimental.pallas import tpu as pltpu

K_RAW, H_RAW, N_RAW = 28 * 28 * 1, 120, 10     # logical sizes from the module
H_PAD, N_PAD = 128, 128                        # lane-dense padded sizes
NEG_INF = -1e30


def _round_up(v, m):
    return ((v + m - 1) // m) * m


def mlp_softmax_kernel(x_ref, w1_ref, b1_ref, w2_ref, b2_ref, o_ref):
    # x_ref: (TB, 784) f32      w1_ref: (784, 128) bf16   b1_ref: (1, 128) f32
    # w2_ref: (128, 128) bf16   b2_ref: (1, 128) f32      o_ref: (TB, 128) f32
    x = x_ref[...].astype(jnp.bfloat16)   # cast in-kernel; no wrapper copy

    # fc1 (MXU, bf16 operands, f32 accumulate) + bias + ReLU in f32.
    h = jnp.dot(x, w1_ref[...], preferred_element_type=jnp.float32)
    h = jnp.maximum(h + b1_ref[...], 0.0)

    # fc2 (MXU) + bias.  Padded output columns carry bias -1e30.
    logits = jnp.dot(h.astype(jnp.bfloat16), w2_ref[...],
                     preferred_element_type=jnp.float32) + b2_ref[...]

    # Numerically stable softmax over the lane axis; padded columns underflow
    # to exactly 0, so row sums are unaffected.  Reciprocal goes to the EUP.
    m = jnp.max(logits, axis=1, keepdims=True)
    e = jnp.exp(logits - m)
    denom = jnp.sum(e, axis=1, keepdims=True)
    o_ref[...] = (e * pl.reciprocal(denom, approx=True)).astype(o_ref.dtype)


def prepare_params(w1, b1, w2, b2):
    """Pad/cast the weights once (hoisted out of the per-call path).
    w1: (784,120), b1: (120,), w2: (120,10), b2: (10,) stored as (in, out)."""
    w1p = jnp.zeros((K_RAW, H_PAD), jnp.bfloat16)
    w1p = w1p.at[:, :H_RAW].set(w1.astype(jnp.bfloat16))
    b1p = jnp.zeros((1, H_PAD), jnp.float32)
    b1p = b1p.at[:, :H_RAW].set(b1.reshape(1, -1).astype(jnp.float32))

    w2p = jnp.zeros((H_PAD, N_PAD), jnp.bfloat16)
    w2p = w2p.at[:H_RAW, :N_RAW].set(w2.astype(jnp.bfloat16))
    # Padded output columns get a huge negative bias -> softmax prob exactly 0.
    b2p = jnp.full((1, N_PAD), NEG_INF, jnp.float32)
    b2p = b2p.at[:, :N_RAW].set(b2.reshape(1, -1).astype(jnp.float32))
    return w1p, b1p, w2p, b2p


def _choose_tile(B, tile_b):
    """Batch tile: multiple of 8, <=7 rows of waste, and >=2 grid steps when
    there is enough work so both v7x TensorCores get a 'parallel' step."""
    b8 = _round_up(max(B, 1), 8)
    n_tiles = pl.cdiv(b8, tile_b)
    if b8 >= 16:
        n_tiles = max(n_tiles, 2)
    return _round_up(pl.cdiv(b8, n_tiles), 8)


def cs21b003_forward(x, params, tile_b=1024):
    """x: (B, 1, 28, 28) f32; params from prepare_params().
    Returns (B, 10) f32 softmax probabilities."""
    w1p, b1p, w2p, b2p = params
    B = x.shape[0]
    x_flat = x.reshape(B, K_RAW).astype(jnp.float32)   # torch.flatten(x, 1)

    tb = _choose_tile(B, tile_b)
    grid = (pl.cdiv(B, tb),)   # ragged last block is masked by Pallas

    flops = 2 * B * (K_RAW * H_PAD + H_PAD * N_PAD)
    bytes_accessed = (B * K_RAW * 4                     # x stream (f32)
                      + B * N_PAD * 4                   # output (f32)
                      + K_RAW * H_PAD * 2 + H_PAD * N_PAD * 2   # weights
                      + (H_PAD + N_PAD) * 4)            # biases

    out = pl.pallas_call(
        mlp_softmax_kernel,
        out_shape=jax.ShapeDtypeStruct((B, N_PAD), jnp.float32),
        grid=grid,
        in_specs=[
            pl.BlockSpec((tb, K_RAW), lambda i: (i, 0)),       # x: streams
            pl.BlockSpec((K_RAW, H_PAD), lambda i: (0, 0)),    # W1: resident
            pl.BlockSpec((1, H_PAD), lambda i: (0, 0)),        # b1: resident
            pl.BlockSpec((H_PAD, N_PAD), lambda i: (0, 0)),    # W2: resident
            pl.BlockSpec((1, N_PAD), lambda i: (0, 0)),        # b2: resident
        ],
        out_specs=pl.BlockSpec((tb, N_PAD), lambda i: (i, 0)),
        compiler_params=pltpu.CompilerParams(
            dimension_semantics=("parallel",)),
        cost_estimate=pl.CostEstimate(
            flops=flops,
            transcendentals=B * N_PAD,
            bytes_accessed=bytes_accessed),
    )(x_flat, w1p, b1p, w2p, b2p)

    # Strip the 118 padded softmax columns.
    return out[:, :N_RAW]


def init_params(key):
    """Deterministic init mimicking nn.Linear default (U[-1/sqrt(fan_in), ...]).
    Stored as (in, out) so the kernel does x @ W (== torch x @ W.T)."""
    k1, k2, k3, k4 = jax.random.split(key, 4)
    bound1 = 1.0 / jnp.sqrt(K_RAW)
    bound2 = 1.0 / jnp.sqrt(H_RAW)
    w1 = jax.random.uniform(k1, (K_RAW, H_RAW), jnp.float32, -bound1, bound1)
    b1 = jax.random.uniform(k2, (H_RAW,), jnp.float32, -bound1, bound1)
    w2 = jax.random.uniform(k3, (H_RAW, N_RAW), jnp.float32, -bound2, bound2)
    b2 = jax.random.uniform(k4, (N_RAW,), jnp.float32, -bound2, bound2)
    return w1, b1, w2, b2


if __name__ == "__main__":
    key = jax.random.PRNGKey(0)
    k_x, k_p = jax.random.split(key)
    B = 2
    x = jax.random.normal(k_x, (B, 1, 28, 28), jnp.float32)
    w1, b1, w2, b2 = init_params(k_p)
    params = prepare_params(w1, b1, w2, b2)   # hoisted: done once per model

    out = cs21b003_forward(x, params)
    out = jax.block_until_ready(out)

    # Sanity: correct shape, softmax rows sum to ~1 (approx reciprocal), and
    # it matches a pure-JAX f32 reference within bf16-matmul tolerance.
    assert out.shape == (B, 10)
    assert jnp.allclose(jnp.sum(out, axis=1), 1.0, atol=5e-3)
    ref_h = jnp.maximum(x.reshape(B, -1) @ w1 + b1, 0.0)
    ref = jax.nn.softmax(ref_h @ w2 + b2, axis=1)
    assert jnp.allclose(out, ref, atol=2e-2), "mismatch vs reference"
    print("KERNEL_OK")
</pallas_src>

<mosaic_0001>
module attributes {stable_mosaic.version = 11 : i64} {
  func.func @mlp_softmax_kernel(%arg0: i32, %arg1: memref<8x784xf32, #tpu.memory_space<vmem>>, %arg2: memref<784x128xbf16, #tpu.memory_space<vmem>>, %arg3: memref<1x128xf32, #tpu.memory_space<vmem>>, %arg4: memref<128x128xbf16, #tpu.memory_space<vmem>>, %arg5: memref<1x128xf32, #tpu.memory_space<vmem>>, %arg6: memref<8x128xf32, #tpu.memory_space<vmem>>) attributes {dimension_semantics = [#tpu.dimension_semantics<parallel>], iteration_bounds = array<i64: 1>, scalar_prefetch = 0 : i64, scratch_operands = 0 : i64, tpu.core_type = #tpu.core_type<tc>, window_params = [{transform_indices = @transform_0, window_bounds = array<i64: 8, 784>}, {pipeline_mode = #tpu.pipeline_mode<synchronous>, transform_indices = @transform_1, window_bounds = array<i64: 784, 128>}, {pipeline_mode = #tpu.pipeline_mode<synchronous>, transform_indices = @transform_2, window_bounds = array<i64: 1, 128>}, {pipeline_mode = #tpu.pipeline_mode<synchronous>, transform_indices = @transform_3, window_bounds = array<i64: 128, 128>}, {pipeline_mode = #tpu.pipeline_mode<synchronous>, transform_indices = @transform_4, window_bounds = array<i64: 1, 128>}, {transform_indices = @transform_5, window_bounds = array<i64: 8, 128>}]} {
    %c0 = arith.constant 0 : index
    %c0_0 = arith.constant 0 : index
    %0 = vector.load %arg1[%c0, %c0_0] : memref<8x784xf32, #tpu.memory_space<vmem>>, vector<8x784xf32>
    %1 = arith.truncf %0 : vector<8x784xf32> to vector<8x784xbf16>
    %c0_1 = arith.constant 0 : index
    %c0_2 = arith.constant 0 : index
    %2 = vector.load %arg2[%c0_1, %c0_2] : memref<784x128xbf16, #tpu.memory_space<vmem>>, vector<784x128xbf16>
    %cst = arith.constant dense<0.000000e+00> : vector<8x128xf32>
    %3 = tpu.matmul %1, %2, %cst {dimension_numbers = #tpu.dot_dimension_numbers<[1], [0], [0], [1], [0, 0, 1, 1], [], []>} : vector<8x784xbf16>, vector<784x128xbf16>, vector<8x128xf32> -> vector<8x128xf32>
    %c0_3 = arith.constant 0 : index
    %c0_4 = arith.constant 0 : index
    %4 = vector.load %arg3[%c0_3, %c0_4] : memref<1x128xf32, #tpu.memory_space<vmem>>, vector<1x128xf32>
    %5 = vector.broadcast %4 : vector<1x128xf32> to vector<8x128xf32>
    %6 = arith.addf %3, %5 : vector<8x128xf32>
    %cst_5 = arith.constant 0.000000e+00 : f32
    %7 = vector.broadcast %cst_5 : f32 to vector<8x128xf32>
    %8 = arith.maximumf %6, %7 : vector<8x128xf32>
    %9 = arith.truncf %8 : vector<8x128xf32> to vector<8x128xbf16>
    %c0_6 = arith.constant 0 : index
    %c0_7 = arith.constant 0 : index
    %10 = vector.load %arg4[%c0_6, %c0_7] : memref<128x128xbf16, #tpu.memory_space<vmem>>, vector<128x128xbf16>
    %cst_8 = arith.constant dense<0.000000e+00> : vector<8x128xf32>
    %11 = tpu.matmul %9, %10, %cst_8 {dimension_numbers = #tpu.dot_dimension_numbers<[1], [0], [0], [1], [0, 0, 1, 1], [], []>} : vector<8x128xbf16>, vector<128x128xbf16>, vector<8x128xf32> -> vector<8x128xf32>
    %c0_9 = arith.constant 0 : index
    %c0_10 = arith.constant 0 : index
    %12 = vector.load %arg5[%c0_9, %c0_10] : memref<1x128xf32, #tpu.memory_space<vmem>>, vector<1x128xf32>
    %13 = vector.broadcast %12 : vector<1x128xf32> to vector<8x128xf32>
    %14 = arith.addf %11, %13 : vector<8x128xf32>
    %cst_11 = arith.constant dense<0xFF800000> : vector<8xf32>
    %15 = vector.multi_reduction <maximumf>, %14, %cst_11 [1] : vector<8x128xf32> to vector<8xf32>
    %16 = vector.shape_cast %15 : vector<8xf32> to vector<8x1xf32>
    %17 = vector.broadcast %16 : vector<8x1xf32> to vector<8x128xf32>
    %18 = arith.subf %14, %17 : vector<8x128xf32>
    %19 = math.exp %18 : vector<8x128xf32>
    %cst_12 = arith.constant dense<0.000000e+00> : vector<8xf32>
    %20 = vector.multi_reduction <add>, %19, %cst_12 [1] : vector<8x128xf32> to vector<8xf32>
    %21 = vector.shape_cast %20 : vector<8xf32> to vector<8x1xf32>
    %22 = tpu.reciprocal %21 {approx = true} : vector<8x1xf32> -> vector<8x1xf32>
    %23 = vector.broadcast %22 : vector<8x1xf32> to vector<8x128xf32>
    %24 = arith.mulf %19, %23 : vector<8x128xf32>
    %c0_13 = arith.constant 0 : index
    %c0_14 = arith.constant 0 : index
    %25 = vector.load %arg6[%c0_13, %c0_14] : memref<8x128xf32, #tpu.memory_space<vmem>>, vector<8x128xf32>
    tpu.vector_store %arg6[%c0_13, %c0_14], %24 {strides = array<i32>} : memref<8x128xf32, #tpu.memory_space<vmem>>, vector<8x128xf32>,
    return
  }
  func.func @transform_0(%arg0: i32) -> (i32, i32) {
    %c0_i32 = arith.constant 0 : i32
    %c0_i32_0 = arith.constant 0 : i32
    return %arg0, %c0_i32 : i32, i32
  }
  func.func @transform_1(%arg0: i32) -> (i32, i32) {
    %c0_i32 = arith.constant 0 : i32
    %c0_i32_0 = arith.constant 0 : i32
    %c0_i32_1 = arith.constant 0 : i32
    return %c0_i32, %c0_i32_0 : i32, i32
  }
  func.func @transform_2(%arg0: i32) -> (i32, i32) {
    %c0_i32 = arith.constant 0 : i32
    %c0_i32_0 = arith.constant 0 : i32
    %c0_i32_1 = arith.constant 0 : i32
    return %c0_i32, %c0_i32_0 : i32, i32
  }
  func.func @transform_3(%arg0: i32) -> (i32, i32) {
    %c0_i32 = arith.constant 0 : i32
    %c0_i32_0 = arith.constant 0 : i32
    %c0_i32_1 = arith.constant 0 : i32
    return %c0_i32, %c0_i32_0 : i32, i32
  }
  func.func @transform_4(%arg0: i32) -> (i32, i32) {
    %c0_i32 = arith.constant 0 : i32
    %c0_i32_0 = arith.constant 0 : i32
    %c0_i32_1 = arith.constant 0 : i32
    return %c0_i32, %c0_i32_0 : i32, i32
  }
  func.func @transform_5(%arg0: i32) -> (i32, i32) {
    %c0_i32 = arith.constant 0 : i32
    %c0_i32_0 = arith.constant 0 : i32
    return %arg0, %c0_i32 : i32, i32
  }
}

</mosaic_0001>

<bundles_post_ra>
// kernel: tpu_custom_call.1
= control target key start
LH: loop header
LB: loop body
LE: loop exit
PB: predicated region body
PF: predicated region fallthrough
CT: control target
= control target key end

     0   :  { %10 = vsyncpa [#allocation3], 0  ;;  %s1293_s0 = inlined_call_operand.hbm [shape: f32[2,784], index: 0, kind: input, shape index: {}]   ;;  %s1294_s1 = inlined_call_operand.hbm [shape: bf16[784,128], index: 1, kind: input, shape index: {}]   ;;  %s1295_s2 = inlined_call_operand.vmem [shape: f32[1,128], index: 2, kind: input, shape index: {}]   ;;  %s1296_s3 = inlined_call_operand.hbm [shape: bf16[128,128], index: 3, kind: input, shape index: {}]   ;;  %s1297_s4 = inlined_call_operand.vmem [shape: f32[1,128], index: 4, kind: input, shape index: {}]   ;;  %s1298_s5 = inlined_call_operand.hbm [shape: f32[2,128], index: 5, kind: output, shape index: {}]  }
   0x1   :  { %11 = vsyncpa [#allocation6], 0 }
   0x2   :  { %12 = vsyncpa [#allocation4], 0 }
   0x3   :  { %17 = vsyncadd [#allocation3], 672  ;;  %s1203_s18 = smov [#allocation5]  }
   0x4   :  { %s30_s19 = sshll.u32 %s1203_s18, 4  ;;  %s31_s19 = int_to_ptr.vmem [resolvable:$true] %s30_s19 }
   0x5   :  { %s1125_s20 = scalar_lea.vmem %s31_s19, 6272  ;;  %p1130_p1 = scmp.lt.s32.totalorder %s31_s19, %s31_s19 }
   0x6   :  { %p1126_p0 = scmp.ne.s32.totalorder %s31_s19, %s1125_s20  ;;  %p1131_p2 = scmp.lt.s32.totalorder %s1125_s20, %s1125_s20 }
   0x8   :  { %p1132_p3 = por %p1131_p2, %p1130_p1 }
   0xa   :  { %p1133_p4 = pnand %p1132_p3, %p1126_p0 }
   0xc   :  { %1136 = shalt.err (!%p1133_p4)
}
   0xd   :  { %s1204_s21 = smov 64   ;;  %s1205_s22 = smov 4  }
   0xe   :  { %36 = dma.hbm_to_vmem [thread:$0]  %s1294_s1, 6272, %s31_s19, [#allocation6], %s1204_s21, %s1204_s21, %s1205_s22  }
   0xf   :  { %s1206_s25 = smov [#allocation2]  }
  0x10   :  { %s18_s26 = sshll.u32 %s1206_s25, 4  ;;  %s19_s26 = int_to_ptr.vmem [resolvable:$true] %s18_s26 }
  0x11   :  { %s1145_s27 = scalar_lea.vmem %s19_s26, 224  ;;  %s1149_s28 = scalar_lea.vmem %s19_s26, 896 }
  0x12   :  { %p1146_p5 = scmp.ne.s32.totalorder %s19_s26, %s1145_s27  ;;  %p1150_p6 = scmp.lt.s32.totalorder %s19_s26, %s19_s26 }
  0x13   :  { %p1151_p7 = scmp.lt.s32.totalorder %s1149_s28, %s1145_s27 }
  0x15   :  { %p1152_p8 = por %p1151_p7, %p1150_p6 }
  0x17   :  { %p1153_p9 = pnand %p1152_p8, %p1146_p5 }
  0x19   :  { %1156 = shalt.err (!%p1153_p9)
}
  0x1a   :  { %s1207_s29 = smov 224   ;;  %s1208_s30 = smov 14  }
  0x1b   :  { %24 = dma.hbm_to_vmem [thread:$0]  %s1293_s0, 224, %s19_s26, [#allocation3], %s1207_s29, %s1207_s29, %s1208_s30  }
  0x1c   :  { %s1209_s8 = smov [#allocation7]  }
  0x1d   :  { %s44_s9 = sshll.u32 %s1209_s8, 4  ;;  %s45_s9 = int_to_ptr.vmem [resolvable:$true] %s44_s9 }
  0x1e   :  { %s1165_s1 = scalar_lea.vmem %s45_s9, 1024  ;;  %p1170_p11 = scmp.lt.s32.totalorder %s45_s9, %s45_s9 }
  0x1f   :  { %p1166_p10 = scmp.ne.s32.totalorder %s45_s9, %s1165_s1  ;;  %p1171_p12 = scmp.lt.s32.totalorder %s1165_s1, %s1165_s1 }
  0x21   :  { %p1172_p13 = por %p1171_p12, %p1170_p11 }
  0x23   :  { %p1173_p0 = pnand %p1172_p13, %p1166_p10 }
  0x25   :  { %1176 = shalt.err (!%p1173_p0)
}
  0x26   :  { %50 = dma.hbm_to_vmem [thread:$0]  %s1296_s3, 1024, %s45_s9, [#allocation6], %s1204_s21, %s1204_s21, %s1205_s22  }
  0x27   :  { %1197 = dma.done.wait [#allocation3], 896  }
  0x28   :  { %1198 = vsyncadd [#allocation3], 4294966400 }
  0x29   :  { %1199 = dma.done.wait [#allocation6], 7296  }
  0x2a   :  { %1200 = vsyncadd [#allocation6], 4294960000  ;;  %v1044_v0 = vld [vmem:[#allocation5 + $0x78] sm:$0xff]   ;;  %v1048_v4 = vld [vmem:[#allocation5 + $0x70] sm:$0xff]   ;;  %v1210_v23 = vmov 1983009808   ;;  %v86_v25 = vlaneseq }
  0x2b   :  { %v1045_v1 = vld [vmem:[#allocation5 + $0x38] sm:$0xff]   ;;  %928 = vmatprep.subr.bf16.mxu0 %v1044_v0  ;;  %v1049_v5 = vld [vmem:[#allocation5 + $0x30] sm:$0xff]   ;;  %v1052_v8 = vld [vmem:[#allocation5 + $0x68] sm:$0xff]   ;;  %v84_v24 = vunpack.c.l.s4 %v1210_v23  ;;  %v1211_v47 = vmov 0.0   ;;  %vm1212_vm0 = vmmov 0   ;;  %vm563_vm1 = vcmask 130048  }
  0x2c   :  { %v1046_v2 = vld [vmem:[#allocation5 + $0xf8] sm:$0xff]   ;;  %929 = vmatpush3.bf16.msra.mxu0 %v1045_v1  ;;  %v1050_v6 = vld [vmem:[#allocation5 + $0xf0] sm:$0xff]   ;;  %v1053_v9 = vld [vmem:[#allocation5 + $0x28] sm:$0xff]   ;;  %v87_v31 = vshrl.u32 %v86_v25, 7 }
  0x2d   :  { %v1047_v3 = vld [vmem:[#allocation5 + $0xb8] sm:$0xff]   ;;  %950 = vmatprep.subr.bf16.mxu1 %v1046_v2  ;;  %930 = vmatprep.subr.bf16.mxu0 %v1048_v4  ;;  %v1051_v7 = vld [vmem:[#allocation5 + $0xb0] sm:$0xff]   ;;  %v1054_v10 = vld [vmem:[#allocation5 + $0xe8] sm:$0xff]   ;;  %v85_v30 = vunpack.c.0.s8 %v84_v24 }
  0x2e   :  { %951 = vmatpush3.bf16.msra.mxu1 %v1047_v3  ;;  %v1055_v11 = vld [vmem:[#allocation5 + $0xa8] sm:$0xff]   ;;  %v1056_v12 = vld [vmem:[#allocation5 + $0x60] sm:$0xff]   ;;  %v1060_v16 = vld [vmem:[#allocation5 + $0x58] sm:$0xff]  }
  0x2f   :  { %952 = vmatprep.subr.bf16.mxu1 %v1050_v6  ;;  %v1057_v13 = vld [vmem:[#allocation5 + $0x20] sm:$0xff]   ;;  %v1061_v17 = vld [vmem:[#allocation5 + $0x18] sm:$0xff]   ;;  %v1064_v20 = vld [vmem:[#allocation5 + $0x50] sm:$0xff]   ;;  %v1261_v36 = vsub.s32 %v85_v30, %v87_v31 }
  0x30   :  { %931 = vmatpush3.bf16.msra.mxu0 %v1049_v5  ;;  %v1058_v14 = vld [vmem:[#allocation5 + $0xe0] sm:$0xff]   ;;  %v1062_v18 = vld [vmem:[#allocation5 + $0xd8] sm:$0xff]   ;;  %v1065_v21 = vld [vmem:[#allocation5 + $0x10] sm:$0xff]  }
  0x31   :  { %932 = vmatprep.subr.bf16.mxu0 %v1052_v8  ;;  %v1059_v15 = vld [vmem:[#allocation5 + $0xa0] sm:$0xff]   ;;  %v1063_v19 = vld [vmem:[#allocation5 + $0x98] sm:$0xff]   ;;  %v1066_v22 = vld [vmem:[#allocation5 + $0xd0] sm:$0xff]  }
  0x32   :  { %953 = vmatpush3.bf16.msra.mxu1 %v1051_v7  ;;  %v1067_v26 = vld [vmem:[#allocation5 + $0x90] sm:$0xff]   ;;  %v1068_v27 = vld [vmem:[#allocation5 + $0x48] sm:$0xff]   ;;  %v1072_v33 = vld [vmem:[#allocation5 + $0x40] sm:$0xff]  }
  0x33   :  { %954 = vmatprep.subr.bf16.mxu1 %v1054_v10  ;;  %v1069_v28 = vld [vmem:[#allocation5 + $0x8] sm:$0xff]   ;;  %v1073_v34 = vld [vmem:[#allocation5] sm:$0xff]   ;;  %v1080_v42 = vld [vmem:[#allocation5 + $0x178] sm:$0xff]  }
  0x34   :  { %933 = vmatpush3.bf16.msra.mxu0 %v1053_v9  ;;  %v1070_v29 = vld [vmem:[#allocation5 + $0xc8] sm:$0xff]   ;;  %v1074_v35 = vld [vmem:[#allocation5 + $0xc0] sm:$0xff]   ;;  %v1083_v52 = vld [vmem:[#allocation5 + $0x138] sm:$0xff]  }
  0x35   :  { %934 = vmatprep.subr.bf16.mxu0 %v1056_v12  ;;  %v1071_v32 = vld [vmem:[#allocation5 + $0x88] sm:$0xff]   ;;  %v1077_v38 = vld [vmem:[#allocation2 + $0x1c] ss:$14 sps:$4 sm:$0xff]   ;;  %v1090_v63 = vld [vmem:[#allocation5 + $0x158] sm:$0xff]  }
  0x36   :  { %955 = vmatpush3.bf16.msra.mxu1 %v1055_v11  ;;  %v1075_v37 = vld [vmem:[#allocation2] ss:$14 sps:$4 sm:$0xff]   ;;  %v1079_v39 = vld [vmem:[#allocation5 + $0x80] sm:$0xff]   ;;  %v103_v41 = vrot.slane %v1077_v38, %v1261_v36  ;;  %v1081_v43 = vld [vmem:[#allocation2 + $0x4] ss:$14 sps:$4 sm:$0xff]  }
  0x37   :  { %956 = vmatprep.subr.bf16.mxu1 %v1058_v14  ;;  %v89_v40 = vrot.slane %v1075_v37, %v1261_v36  ;;  %v1082_v44 = vld [vmem:[#allocation2 + $0x20] ss:$14 sps:$4 sm:$0xff]   ;;  %v96_v48 = vrot.slane %v1081_v43, %v1261_v36  ;;  %v1088_v61 = vld [vmem:[#allocation5 + $0x160] sm:$0xff]   ;;  %v1102_v5 = vld [vmem:[#allocation2 + $0x24] ss:$14 sps:$4 sm:$0xff]  }
  0x38   :  { %935 = vmatpush3.bf16.msra.mxu0 %v1057_v13  ;;  %v110_v49 = vrot.slane %v1082_v44, %v1261_v36  ;;  %v1084_v55 = vld [vmem:[#allocation5 + $0x170] sm:$0xff]   ;;  %v1086_v59 = vld [vmem:[#allocation5 + $0x168] sm:$0xff]   ;;  %v1089_v62 = vld [vmem:[#allocation5 + $0x120] sm:$0xff]   ;;  %v139_v10 = vrot.slane %v1102_v5, %v1261_v36 }
  0x39   :  { %936 = vmatprep.subr.bf16.mxu0 %v1060_v16  ;;  %v112_v45 = vcombine.high %v89_v40, %v103_v41  ;;  %v111_v46 = vcombine.low %v89_v40, %v103_v41  ;;  %v1085_v58 = vld [vmem:[#allocation5 + $0x130] sm:$0xff]   ;;  %v1087_v60 = vld [vmem:[#allocation5 + $0x128] sm:$0xff]   ;;  %v1098_v0 = vld [vmem:[#allocation5 + $0x180] sm:$0xff]  }
  0x3a   :  { %957 = vmatpush3.bf16.msra.mxu1 %v1059_v15  ;;  %v114_v53 = vcombine.high %v96_v48, %v110_v49  ;;  %v113_v54 = vcombine.low %v96_v48, %v110_v49  ;;  %v1091_v1 = vld [vmem:[#allocation5 + $0x118] sm:$0xff]   ;;  %v1101_v3 = vld [vmem:[#allocation2 + $0xc] ss:$14 sps:$4 sm:$0x33]   ;;  %v1094_v12 = vld [vmem:[#allocation5 + $0x148] sm:$0xff]  }
  0x3b   :  { %958 = vmatprep.subr.bf16.mxu1 %v1062_v18  ;;  %v158_v50 = vpack.c.bf16 %v112_v45, %v112_v45  ;;  %v157_v51 = vpack.c.bf16 %v111_v46, %v111_v46  ;;  %v1099_v2 = vld [vmem:[#allocation2 + $0x8] ss:$14 sps:$4 sm:$0xff]   ;;  %v132_v8 = vrot.slane %v1101_v3, %v1261_v36  ;;  %v1108_v25 = vld [vmem:[#allocation7 + $0x20] sm:$0xff]  }
  0x3c   :  { %937 = vmatpush3.bf16.msra.mxu0 %v1061_v17  ;;  %v160_v56 = vpack.c.bf16 %v114_v53, %v114_v53  ;;  %v159_v57 = vpack.c.bf16 %v113_v54, %v113_v54  ;;  %v1092_v4 = vld [vmem:[#allocation5 + $0x150] sm:$0xff]   ;;  %v125_v7 = vrot.slane %v1099_v2, %v1261_v36  ;;  %v1095_v17 = vld [vmem:[#allocation5 + $0x108] sm:$0xff]   ;;  %v1096_v18 = vld [vmem:[#allocation5 + $0x140] sm:$0xff]  }
  0x3d   :  { %938 = vmatprep.subr.bf16.mxu0 %v1064_v20  ;;  %599 = vmatprep.mubr.bf16.mxu0 %v158_v50  ;;  %v1104_v6 = vld [vmem:[#allocation2 + $0x28] ss:$14 sps:$4 sm:$0x33]   ;;  %v1097_v20 = vld [vmem:[#allocation5 + $0x100] sm:$0xff]  }
  0x3e   :  { %959 = vmatpush3.bf16.msra.mxu1 %v1063_v19  ;;  %639 = vmatprep.mubr.bf16.mxu1 %v160_v56  ;;  %v1093_v9 = vld [vmem:[#allocation5 + $0x110] sm:$0xff]   ;;  %v146_v11 = vrot.slane %v1104_v6, %v1261_v36  ;;  %v148_v13 = vcombine.high %v125_v7, %v139_v10  ;;  %v147_v19 = vcombine.low %v125_v7, %v139_v10  ;;  %v1106_v23 = vld [vmem:[#allocation7 + $0x30] sm:$0xff]   ;;  %v919_v56 = vld [vmem:[%s1297_s4] ss:$0 sm:$0xff] }
  0x3f   :  { %960 = vmatprep.subr.bf16.mxu1 %v1066_v22  ;;  %v1105_v22 = vld [vmem:[#allocation7 + $0x38] sm:$0xff]   ;;  %v1107_v24 = vld [vmem:[#allocation7 + $0x28] sm:$0xff]  }
  0x40   :  { %939 = vmatpush3.bf16.msra.mxu0 %v1065_v21  ;;  %v149_v14 = vcombine.low %v132_v8, %v146_v11  ;;  %v162_v15 = vpack.c.bf16 %v148_v13, %v148_v13  ;;  %v161_v21 = vpack.c.bf16 %v147_v19, %v147_v19 }
  0x41   :  { %940 = vmatprep.subr.bf16.mxu0 %v1068_v27  ;;  %v1110_v27 = vld [vmem:[#allocation7 + $0x10] sm:$0xff]  }
  0x42   :  { %961 = vmatpush3.bf16.msra.mxu1 %v1067_v26  ;;  %v163_v16 = vpack.c.bf16 %v149_v14, %v149_v14  ;;  %v1109_v26 = vld [vmem:[#allocation7 + $0x18] sm:$0xff]  }
  0x43   :  { %962 = vmatprep.subr.bf16.mxu1 %v1070_v29  ;;  %v1112_v29 = vld [vmem:[#allocation7] sm:$0xff]  }
  0x44   :  { %941 = vmatpush3.bf16.msra.mxu0 %v1069_v28  ;;  %v1111_v28 = vld [vmem:[#allocation7 + $0x8] sm:$0xff]  }
  0x45   :  { %942 = vmatprep.subr.bf16.mxu0 %v1072_v33 }
  0x46   :  { %963 = vmatpush3.bf16.msra.mxu1 %v1071_v32 }
  0x47   :  { %964 = vmatprep.subr.bf16.mxu1 %v1074_v35 }
  0x48   :  { %943 = vmatpush3.bf16.msra.mxu0 %v1073_v34 }
  0x49   :  { %972 = vmatprep.subr.bf16.mxu0 %v1080_v42  ;;  %v868_v42 = vld [vmem:[%s1295_s2] ss:$0 sm:$0xff] }
  0x4a   :  { %965 = vmatpush3.bf16.msra.mxu1 %v1079_v39 }
  0x4b   :  { %1005 = vmatprep.subr.bf16.mxu1 %v1211_v47  ;;  %600 = vmatmul.mubr.bf16.vlgmr.msra.gmra.mxu0 %v157_v51 }
  0x4c   :  { %973 = vmatpush3.bf16.msra.mxu0 %v1083_v52  ;;  %679 = vmatprep.mubr.bf16.mxu0 %v162_v15 }
  0x4d   :  { %974 = vmatprep.subr.bf16.mxu0 %v1084_v55  ;;  %640 = vmatmul.mubr.bf16.vlgmr.msra.gmra.mxu1 %v159_v57 }
  0x4e   :  { %1007 = vmatprep.mubr.msk.bf16.mxu1 %vm1212_vm0, %v1211_v47  ;;  %1006 = vmatpush3.bf16.msra.mxu1 %v1098_v0 }
  0x4f   :  { %1011 = vmatprep.subr.bf16.mxu1 %v1211_v47 }
  0x50   :  { %975 = vmatpush3.bf16.msra.mxu0 %v1085_v58 }
  0x51   :  { %976 = vmatprep.subr.bf16.mxu0 %v1086_v59 }
  0x54   :  { %977 = vmatpush3.bf16.msra.mxu0 %v1087_v60 }
  0x55   :  { %978 = vmatprep.subr.bf16.mxu0 %v1088_v61  ;;  %1008 = vmatmul.mubr.msk.bf16.vlgmr.msra.gmra.mxu1 %vm563_vm1, %v163_v16 }
  0x56   :  { %1027 = vmatprep.mubr.msk.bf16.mxu1 %vm1212_vm0, %v1211_v47  ;;  %1012 = vmatpush3.bf16.msra.mxu1 %v1105_v22 }
  0x57   :  { %1013 = vmatprep.subr.bf16.mxu1 %v1211_v47 }
  0x58   :  { %979 = vmatpush3.bf16.msra.mxu0 %v1089_v62 }
  0x59   :  { %980 = vmatprep.subr.bf16.mxu0 %v1090_v63 }
  0x5a   :  { %1014 = vmatpush3.bf16.msra.mxu1 %v1106_v23 }
  0x5b   :  { %1015 = vmatprep.subr.bf16.mxu1 %v1211_v47 }
  0x5c   :  { %981 = vmatpush3.bf16.msra.mxu0 %v1091_v1 }
  0x5d   :  { %982 = vmatprep.subr.bf16.mxu0 %v1092_v4 }
  0x5e   :  { %1016 = vmatpush3.bf16.msra.mxu1 %v1107_v24 }
  0x5f   :  { %1017 = vmatprep.subr.bf16.mxu1 %v1211_v47 }
  0x60   :  { %983 = vmatpush3.bf16.msra.mxu0 %v1093_v9 }
  0x61   :  { %984 = vmatprep.subr.bf16.mxu0 %v1094_v12 }
  0x62   :  { %1018 = vmatpush3.bf16.msra.mxu1 %v1108_v25 }
  0x63   :  { %1019 = vmatprep.subr.bf16.mxu1 %v1211_v47 }
  0x64   :  { %985 = vmatpush3.bf16.msra.mxu0 %v1095_v17 }
  0x65   :  { %986 = vmatprep.subr.bf16.mxu0 %v1096_v18 }
  0x66   :  { %1020 = vmatpush3.bf16.msra.mxu1 %v1109_v26 }
  0x67   :  { %1021 = vmatprep.subr.bf16.mxu1 %v1211_v47 }
  0x68   :  { %987 = vmatpush3.bf16.msra.mxu0 %v1097_v20 }
  0x6a   :  { %1022 = vmatpush3.bf16.msra.mxu1 %v1110_v27 }
  0x6b   :  { %680 = vmatmul.mubr.bf16.vlgmr.msra.gmra.mxu0 %v161_v21  ;;  %1023 = vmatprep.subr.bf16.mxu1 %v1211_v47 }
  0x6e   :  { %1024 = vmatpush3.bf16.msra.mxu1 %v1111_v28 }
  0x6f   :  { %1025 = vmatprep.subr.bf16.mxu1 %v1211_v47 }
  0x72   :  { %1026 = vmatpush3.bf16.msra.mxu1 %v1112_v29 }
 0x10b   :  { %v944_v30 = vpop.f32.mrf.mxu0 }
 0x10d   :  { %v945_v31 = vpop.f32.mrf.mxu0  ;;  %v966_v32 = vpop.f32.mrf.mxu1 }
 0x10e   :  { %v946_v41 = vadd.f32 %v945_v31, %v944_v30 }
 0x10f   :  { %v947_v33 = vpop.f32.mrf.mxu0  ;;  %v967_v34 = vpop.f32.mrf.mxu1 }
 0x110   :  { %v602_v44 = vadd.f32 %v946_v41, %v868_v42  ;;  %v968_v45 = vadd.f32 %v967_v34, %v966_v32 }
 0x111   :  { %v948_v35 = vpop.f32.mrf.mxu0  ;;  %v969_v36 = vpop.f32.mrf.mxu1 }
 0x112   :  { %v642_v48 = vadd.f32 %v968_v45, %v602_v44 }
 0x113   :  { %v970_v37 = vpop.f32.mrf.mxu1 }
 0x115   :  { %v721_v38 = vpop.f32.mrf.mxu1 }
 0x117   :  { %v1009_v39 = vpop.f32.mrf.mxu1 }
 0x119   :  { %v724_v40 = vpop.f32.mrf.mxu1 }
 0x11b   :  { %v1010_v43 = vpop.f32.mrf.mxu1 }
 0x12b   :  { %v988_v46 = vpop.f32.mrf.mxu0 }
 0x12d   :  { %v989_v47 = vpop.f32.mrf.mxu0 }
 0x12e   :  { %v990_v49 = vadd.f32 %v989_v47, %v988_v46 }
 0x12f   :  { %v991_v50 = vpop.f32.mrf.mxu0 }
 0x130   :  { %v682_v51 = vadd.f32 %v990_v49, %v642_v48 }
 0x131   :  { %v992_v52 = vpop.f32.mrf.mxu0 }
 0x132   :  { %v722_v53 = vadd.f32 %v721_v38, %v682_v51 }
 0x134   :  { %v727_v54 = vmax.f32 %v722_v53, 0.0 }
 0x136   :  { %v728_v55 = vpack.c.bf16 %v727_v54, %v727_v54 }
 0x138   :  { %1028 = vmatmul.mubr.bf16.vlgmr.msra.gmra.mxu1 %v728_v55 }
 0x1f8   :  { %v834_v57 = vpop.f32.mrf.mxu1 }
 0x1f9   :  { %v835_v58 = vadd.f32 %v919_v56, %v834_v57 }
 0x1fa   :  { %v1029_v59 = vpop.f32.mrf.mxu1 }
 0x1fb   :  { %840 = vmax.xlane.f32.xlu0 %v835_v58 }
 0x1fc   :  { %v837_v60 = vpop.f32.mrf.mxu1 }
 0x1fe   :  { %v1030_v61 = vpop.f32.mrf.mxu1 }
 0x284   :  { %v841_v62 = vpop.xlane.xlu0 %840 }
 0x285   :  { %v842_v63 = vsub.f32 %v835_v58, %v841_v62 }
 0x287   :  { %v843_v0 = vmul.f32 1.442695, %v842_v63 }
 0x289   :  { %1113 = vpow2.f32 %v843_v0 }
 0x296   :  { %v1114_v1 = vpop.eup %1113 }
 0x297   :  { %845 = vadd.xlane.f32.xlu0 %v1114_v1 }
 0x320   :  { %v846_v2 = vpop.xlane.xlu0 %845 }
 0x321   :  { %1115 = vrcp.f32 %v846_v2 }
 0x32e   :  { %v1116_v3 = vpop.eup %1115 }
 0x32f   :  { %v848_v4 = vmul.f32 %v1116_v3, %v1114_v1 }
 0x331   :  { %849 = vst [vmem:[#allocation8] sm:$0xff] %v848_v4 }
 0x332   :  { %854 = vsyncadd [#allocation4], 96  ;;  %s1213_s2 = smov [#allocation8]  }
 0x333   :  { %s855_s4 = sshll.u32 %s1213_s2, 4  ;;  %s856_s4 = int_to_ptr.vmem [resolvable:$true] %s855_s4 }
 0x334   :  { %s1177_s14 = scalar_lea.vmem %s856_s4, 32  ;;  %s1181_s15 = scalar_lea.vmem %s856_s4, 128 }
 0x335   :  { %p1178_p1 = scmp.ne.s32.totalorder %s856_s4, %s1177_s14  ;;  %p1182_p2 = scmp.lt.s32.totalorder %s856_s4, %s856_s4 }
 0x336   :  { %p1183_p3 = scmp.lt.s32.totalorder %s1181_s15, %s1177_s14 }
 0x338   :  { %p1184_p4 = por %p1183_p3, %p1182_p2 }
 0x33a   :  { %p1185_p5 = pnand %p1184_p4, %p1178_p1 }
 0x33c   :  { %1188 = shalt.err (!%p1185_p5)
}
 0x33d   :  { %s1214_s16 = smov 32   ;;  %s1215_s17 = smov 2  }
 0x33e   :  { %861 = dma.vmem_to_hbm [thread:$0]  %s856_s4, 32, %s1298_s5, [#allocation4], %s1214_s16, %s1214_s16, %s1215_s17  }
 0x33f   :  { %1201 = dma.done.wait [#allocation4], 128  }
 0x340   :  { %1202 = vsyncadd [#allocation4], 4294967168 }
 0x341   :  { %865 = vsyncpa [#allocation3], 1 }
 0x342   :  { %866 = vsyncpa [#allocation6], 1 }
 0x343   :  { %867 = vsyncpa [#allocation4], 1 }

</bundles_post_ra>
